<compile_context>
chip_gen: v7x
topology: tpu7x:2x2x1
jax: 0.10.0
libtpu: 0.0.40
codegen_flags: <defaults>
</compile_context>

<pallas_src>
import functools
import numpy as np

import jax
import jax.numpy as jnp
from jax.experimental import pallas as pl
from jax.experimental.pallas import tpu as pltpu

# ---------------- configuration (ToRGBLayer hyper-params) ---------------------
B      = 2          # batch
IN_CH  = 8          # in_channels
OUT_CH = 3          # out_channels (RGB)
W_DIM  = 32         # w_dim (latent dim)
RES    = 16         # spatial resolution
KSIZE  = 1          # ToRGBLayer default kernel_size


def _round_up(x, m):
    return (x + m - 1) // m * m


# -------------------- parameter packing (off the per-call path) ---------------
def pack_torgb_params(params, batch):
    """Pack all ToRGB parameters into one f32 slab, gains folded, batch block-diag.

    Slab layout (rows x (batch*Cin) cols), all regions sublane(8)-aligned:
      [0 : B*W_DIM]           A_bd   : block-diag of fc_w.T * (fc_gain*weight_gain)
      [B*W_DIM : +1]          fcb_bd : fc_b * weight_gain, tiled over batch (1, B*Cin)
      [row_w : +B*Cout]       W_bd   : block-diag 1x1 conv weight (B*Cout, B*Cin)
      [row_b : +B*Cout], col0 bias_bd: conv bias tiled over batch (B*Cout, 1)
    """
    f32 = jnp.float32
    fc_w   = jnp.asarray(params["fc_w"], f32)                 # (Cin, W_DIM)
    fc_b   = jnp.asarray(params["fc_b"], f32)                 # (Cin,)
    conv_w = jnp.asarray(params["conv_w"], f32)               # (Cout, Cin, k, k)
    bias   = jnp.asarray(params["bias"], f32)                 # (Cout,)

    cout, cin, kh, kw = conv_w.shape
    assert kh == 1 and kw == 1  # TODO(synk): kernel_size > 1 not supported (ToRGB default is 1)
    w_dim = fc_w.shape[1]
    fc_gain = 1.0 / np.sqrt(w_dim)                            # FC weight_gain (lr_mult=1)
    weight_gain = 1.0 / np.sqrt(cin * kh * kw)                # ToRGB weight_gain

    # gains folded into the packed weights (constant folding, free)
    A   = fc_w.T * (fc_gain * weight_gain)                    # (W_DIM, Cin)
    fcb = fc_b * weight_gain                                  # (Cin,)
    w2d = conv_w.reshape(cout, cin)                           # k=1: squeeze kh,kw

    eye = jnp.eye(batch, dtype=f32)
    A_bd    = jnp.kron(eye, A)                                # (B*W_DIM, B*Cin)
    W_bd    = jnp.kron(eye, w2d)                              # (B*Cout, B*Cin)
    fcb_bd  = jnp.tile(fcb, batch)[None, :]                   # (1, B*Cin)
    bias_bd = jnp.tile(bias, batch)[:, None]                  # (B*Cout, 1)

    bwd, bcin, bcout = batch * w_dim, batch * cin, batch * cout
    row_fcb = bwd
    row_w   = _round_up(bwd + 1, 8)
    row_b   = _round_up(row_w + bcout, 8)
    rows    = _round_up(row_b + bcout, 8)

    slab = jnp.zeros((rows, bcin), f32)
    slab = slab.at[0:bwd, :].set(A_bd)
    slab = slab.at[row_fcb:row_fcb + 1, :].set(fcb_bd)
    slab = slab.at[row_w:row_w + bcout, :].set(W_bd)
    slab = slab.at[row_b:row_b + bcout, 0:1].set(bias_bd)

    meta = dict(batch=batch, w_dim=w_dim, cin=cin, cout=cout,
                row_w=row_w, row_b=row_b)
    return slab, meta


# ------------------------ fused ToRGB kernel ----------------------------------
def _torgb_kernel(wlat_ref, slab_ref, x_ref, out_ref, *, bwd, bcout, row_w, row_b):
    # Affine FC (gains + bias pre-folded, batch block-diag): styles come out
    # already lane-major as (1, B*Cin) -> no in-kernel relayout needed.
    styles = (jnp.dot(wlat_ref[...], slab_ref[0:bwd, :],
                      preferred_element_type=jnp.float32)
              + slab_ref[bwd:bwd + 1, :])                      # (1, B*Cin)

    # Modulate the (block-diagonal) 1x1 conv weight: sublane broadcast, zeros
    # off-block keep batches independent. One VPU mul on a tiny tile.
    wmod = slab_ref[row_w:row_w + bcout, :] * styles           # (B*Cout, B*Cin)

    # Whole batch in ONE MXU push: (B*Cout, B*Cin) @ (B*Cin, HW_tile).
    xv = x_ref[...]
    y = jnp.dot(wmod.astype(xv.dtype), xv,
                preferred_element_type=jnp.float32)            # (B*Cout, HW_tile)

    # bias (lane broadcast) + single full store of the stacked result.
    out_ref[...] = (y + slab_ref[row_b:row_b + bcout, 0:1]).astype(out_ref.dtype)


# --------------------------------- wrapper ------------------------------------
def torgb_forward(x_nchw, w_latent, slab, meta, *, hw_tile=None):
    """x_nchw: (B, Cin, H, W); w_latent: (B, W_DIM); slab/meta from pack_torgb_params."""
    b, cin, h, w = x_nchw.shape
    hw = h * w
    w_dim = w_latent.shape[1]
    assert b == meta["batch"] and cin == meta["cin"] and w_dim == meta["w_dim"]
    cout = meta["cout"]
    bwd, bcin, bcout = b * w_dim, b * cin, b * cout

    # glue (all free / contiguous reshapes)
    x_flat   = x_nchw.reshape(bcin, hw)                        # (B*Cin, H*W)
    wlat_row = w_latent.reshape(1, bwd)                        # (1, B*W_DIM)

    # Tile the spatial (lane) axis so real ToRGB resolutions fit VMEM
    # (degenerates to a single step here). Power-of-two resolutions assumed.
    if hw_tile is None:
        hw_tile = hw if hw <= 2048 else 2048
    assert hw_tile == hw or (hw % hw_tile == 0 and hw_tile % 128 == 0)

    y_flat = pl.pallas_call(
        functools.partial(_torgb_kernel, bwd=bwd, bcout=bcout,
                          row_w=meta["row_w"], row_b=meta["row_b"]),
        grid=(hw // hw_tile,),
        in_specs=[
            pl.BlockSpec((1, bwd), lambda j: (0, 0)),          # latent (resident)
            pl.BlockSpec(slab.shape, lambda j: (0, 0)),        # param slab (resident)
            pl.BlockSpec((bcin, hw_tile), lambda j: (0, j)),   # x tile (lane-dense)
        ],
        out_specs=pl.BlockSpec((bcout, hw_tile), lambda j: (0, j)),
        out_shape=jax.ShapeDtypeStruct((bcout, hw), x_nchw.dtype),
        compiler_params=pltpu.CompilerParams(
            dimension_semantics=("parallel",)),                # 2 TCs on v7x; no-op v5e/v6e
    )(wlat_row, slab, x_flat)

    return y_flat.reshape(b, cout, h, w)                       # -> NCHW (free)


# ------------------------- pure-JAX reference (NCHW) --------------------------
def reference(x, wlat, p):
    styles = (jnp.matmul(wlat, p["fc_w"].T, precision=jax.lax.Precision.HIGHEST)
              * (1.0 / np.sqrt(W_DIM)) + p["fc_b"]) * (1.0 / np.sqrt(IN_CH * KSIZE ** 2))
    w = p["conv_w"].reshape(OUT_CH, IN_CH)                     # k=1
    wmod = w[None, :, :] * styles[:, None, :]                  # (B, Cout, Cin)
    y = jnp.einsum("boi,bihw->bohw", wmod, x,
                   precision=jax.lax.Precision.HIGHEST)
    y = y + p["bias"][None, :, None, None]                     # linear bias_act, no clamp
    return y


if __name__ == "__main__":
    key = jax.random.PRNGKey(0)
    ks = jax.random.split(key, 5)

    # inputs (PyTorch convention: x is NCHW, w is (B, w_dim))
    x = jax.random.normal(ks[0], (B, IN_CH, RES, RES), jnp.float32)
    wlat = jax.random.normal(ks[1], (B, W_DIM), jnp.float32)

    # parameters (shapes from ToRGBLayer.__init__); the module zero-inits `bias`
    # — a small nonzero value is used so that code path is actually exercised.
    params = dict(
        fc_w=jax.random.normal(ks[2], (IN_CH, W_DIM), jnp.float32),   # affine.weight
        fc_b=jnp.ones((IN_CH,), jnp.float32),                         # bias_init=1
        conv_w=jax.random.normal(ks[3], (OUT_CH, IN_CH, KSIZE, KSIZE), jnp.float32),
        bias=0.1 * jax.random.normal(ks[4], (OUT_CH,), jnp.float32),
    )

    # one-time parameter packing (off the per-call path)
    slab, meta = pack_torgb_params(params, batch=B)

    y = torgb_forward(x, wlat, slab, meta)
    y = jax.block_until_ready(y)

    y_ref = reference(x, wlat, params)
    # NOTE: in-kernel dots use default TPU matmul precision vs HIGHEST in the
    # reference; the tolerance absorbs that drift.
    np.testing.assert_allclose(np.asarray(y), np.asarray(y_ref), rtol=2e-2, atol=2e-2)

    print("KERNEL_OK")
</pallas_src>

<mosaic_0001>
module attributes {stable_mosaic.version = 11 : i64} {
  func.func @_torgb_kernel(%arg0: i32, %arg1: memref<1x64xf32, #tpu.memory_space<vmem>>, %arg2: memref<88x16xf32, #tpu.memory_space<vmem>>, %arg3: memref<16x256xf32, #tpu.memory_space<vmem>>, %arg4: memref<6x256xf32, #tpu.memory_space<vmem>>) attributes {dimension_semantics = [#tpu.dimension_semantics<parallel>], iteration_bounds = array<i64: 1>, scalar_prefetch = 0 : i64, scratch_operands = 0 : i64, tpu.core_type = #tpu.core_type<tc>, window_params = [{pipeline_mode = #tpu.pipeline_mode<synchronous>, transform_indices = @transform_0, window_bounds = array<i64: 1, 64>}, {pipeline_mode = #tpu.pipeline_mode<synchronous>, transform_indices = @transform_1, window_bounds = array<i64: 88, 16>}, {transform_indices = @transform_2, window_bounds = array<i64: 16, 256>}, {transform_indices = @transform_3, window_bounds = array<i64: 6, 256>}]} {
    %c0 = arith.constant 0 : index
    %c0_0 = arith.constant 0 : index
    %0 = vector.load %arg1[%c0, %c0_0] : memref<1x64xf32, #tpu.memory_space<vmem>>, vector<1x64xf32>
    %c0_1 = arith.constant 0 : index
    %c0_2 = arith.constant 0 : index
    %1 = vector.load %arg2[%c0_1, %c0_2] : memref<88x16xf32, #tpu.memory_space<vmem>>, vector<64x16xf32>
    %cst = arith.constant dense<0.000000e+00> : vector<1x16xf32>
    %2 = tpu.matmul %0, %1, %cst {dimension_numbers = #tpu.dot_dimension_numbers<[1], [0], [0], [1], [0, 0, 1, 1], [], []>} : vector<1x64xf32>, vector<64x16xf32>, vector<1x16xf32> -> vector<1x16xf32>
    %c64 = arith.constant 64 : index
    %c0_3 = arith.constant 0 : index
    %3 = vector.load %arg2[%c64, %c0_3] : memref<88x16xf32, #tpu.memory_space<vmem>>, vector<1x16xf32>
    %4 = arith.addf %2, %3 : vector<1x16xf32>
    %c72 = arith.constant 72 : index
    %c0_4 = arith.constant 0 : index
    %5 = vector.load %arg2[%c72, %c0_4] : memref<88x16xf32, #tpu.memory_space<vmem>>, vector<6x16xf32>
    %6 = vector.broadcast %4 : vector<1x16xf32> to vector<6x16xf32>
    %7 = arith.mulf %5, %6 : vector<6x16xf32>
    %c0_5 = arith.constant 0 : index
    %c0_6 = arith.constant 0 : index
    %8 = vector.load %arg3[%c0_5, %c0_6] : memref<16x256xf32, #tpu.memory_space<vmem>>, vector<16x256xf32>
    %cst_7 = arith.constant dense<0.000000e+00> : vector<6x256xf32>
    %9 = tpu.matmul %7, %8, %cst_7 {dimension_numbers = #tpu.dot_dimension_numbers<[1], [0], [0], [1], [0, 0, 1, 1], [], []>} : vector<6x16xf32>, vector<16x256xf32>, vector<6x256xf32> -> vector<6x256xf32>
    %c80 = arith.constant 80 : index
    %c0_8 = arith.constant 0 : index
    %10 = vector.load %arg2[%c80, %c0_8] : memref<88x16xf32, #tpu.memory_space<vmem>>, vector<6x1xf32>
    %11 = vector.broadcast %10 : vector<6x1xf32> to vector<6x256xf32>
    %12 = arith.addf %9, %11 : vector<6x256xf32>
    %c0_9 = arith.constant 0 : index
    %c0_10 = arith.constant 0 : index
    %13 = vector.load %arg4[%c0_9, %c0_10] : memref<6x256xf32, #tpu.memory_space<vmem>>, vector<6x256xf32>
    tpu.vector_store %arg4[%c0_9, %c0_10], %12 {strides = array<i32>} : memref<6x256xf32, #tpu.memory_space<vmem>>, vector<6x256xf32>,
    return
  }
  func.func @transform_0(%arg0: i32) -> (i32, i32) {
    %c0_i32 = arith.constant 0 : i32
    %c0_i32_0 = arith.constant 0 : i32
    %c0_i32_1 = arith.constant 0 : i32
    return %c0_i32, %c0_i32_0 : i32, i32
  }
  func.func @transform_1(%arg0: i32) -> (i32, i32) {
    %c0_i32 = arith.constant 0 : i32
    %c0_i32_0 = arith.constant 0 : i32
    %c0_i32_1 = arith.constant 0 : i32
    return %c0_i32, %c0_i32_0 : i32, i32
  }
  func.func @transform_2(%arg0: i32) -> (i32, i32) {
    %c0_i32 = arith.constant 0 : i32
    %c0_i32_0 = arith.constant 0 : i32
    return %c0_i32, %arg0 : i32, i32
  }
  func.func @transform_3(%arg0: i32) -> (i32, i32) {
    %c0_i32 = arith.constant 0 : i32
    %c0_i32_0 = arith.constant 0 : i32
    return %c0_i32, %arg0 : i32, i32
  }
}

</mosaic_0001>

<bundles_post_ra>
// kernel: tpu_custom_call.1
= control target key start
LH: loop header
LB: loop body
LE: loop exit
PB: predicated region body
PF: predicated region fallthrough
CT: control target
= control target key end

     0   :  { %v282_v3 = vmov 0.0|0.0   ;;  %vm283_vm0 = vmmov 0   ;;  %v284_v6 = vmov 0.0   ;;  %s367_s0 = inlined_call_operand.vmem [shape: f32[1,64], index: 0, kind: input, shape index: {}]   ;;  %s368_s1 = inlined_call_operand.vmem [shape: f32[88,16], index: 1, kind: input, shape index: {}]   ;;  %s369_s2 = inlined_call_operand.vmem [shape: f32[16,256], index: 2, kind: input, shape index: {}]   ;;  %s370_s3 = inlined_call_operand.hbm [shape: f32[6,256], index: 3, kind: output, shape index: {}]  }
   0x1   :  { %v16_v0 = vld [vmem:[%s368_s1] sm:$0xff]  ;;  %v17_v1 = vld [vmem:[%s368_s1 + $0x8] sm:$0xff]  ;;  %v18_v2 = vld [vmem:[%s368_s1 + $0x10] sm:$0xff]  ;;  %236 = vmatprep.subr.bf16.mxu0 %v282_v3  ;;  %233 = vmatprep.mubr.msk.f32.mxu0 %vm283_vm0, %v284_v6 }
   0x2   :  { %v237_v4 = vpack.c.bf16 %v17_v1, %v16_v0  ;;  %v19_v5 = vld [vmem:[%s368_s1 + $0x18] sm:$0xff]  ;;  %183 = vmatprep.mubr.f32.mxu1 %v284_v6 }
   0x3   :  { %v240_v7 = vpack.c.bf16 %v19_v5, %v18_v2 }
   0x4   :  { %238 = vmatpush3.bf16.msra.mxu0 %v237_v4 }
   0x5   :  { %8 = vsyncpa [#allocation3], 0  ;;  %239 = vmatprep.subr.bf16.mxu0 %v282_v3  ;;  %v20_v8 = vld [vmem:[%s368_s1 + $0x20] sm:$0xff]  ;;  %v21_v9 = vld [vmem:[%s368_s1 + $0x28] sm:$0xff]  ;;  %vm25_vm1 = vcmask 523264   ;;  %v285_v22 = vmov 0   ;;  %v100_v23 = vlaneseq }
   0x6   :  { %v243_v10 = vpack.c.bf16 %v21_v9, %v20_v8  ;;  %v22_v11 = vld [vmem:[%s368_s1 + $0x30] sm:$0xff]  ;;  %v23_v12 = vld [vmem:[%s368_s1 + $0x38] sm:$0xff]  ;;  %v15_v14 = vld [vmem:[%s367_s0] sm:$0x1]  ;;  %257 = vset.pattern.permute.xlu0 %v285_v22  ;;  %vm115_vm2 = vcmask 130048   ;;  %s286_s15 = smov [#allocation2]  }
   0x7   :  { %v246_v13 = vpack.c.bf16 %v23_v12, %v22_v11  ;;  %v106_v15 = vld [vmem:[%s369_s2 + $0x8] sm:$0xff]  ;;  %v108_v16 = vld [vmem:[%s369_s2 + $0x18] sm:$0xff]  ;;  %v105_v18 = vld [vmem:[%s369_s2] sm:$0xff]  ;;  %v101_v24 = vshrl.u32 %v100_v23, 7  ;;  %s198_s16 = sshll.u32 %s286_s15, 4  ;;  %s199_s16 = int_to_ptr.vmem [resolvable:$true] %s198_s16 }
   0x8   :  { %241 = vmatpush3.bf16.msra.mxu0 %v240_v7  ;;  %v248_v17 = vpack.c.bf16 %v108_v16, %v106_v15  ;;  %v107_v19 = vld [vmem:[%s369_s2 + $0x10] sm:$0xff]  ;;  %v24_v25 = vld [vmem:[%s368_s1 + $0x40] sm:$0x1]  ;;  %v99_v30 = vld [vmem:[%s368_s1 + $0x48] sm:$0x3f]  ;;  %s258_s17 = scalar_lea.vmem %s199_s16, 256  ;;  %p263_p1 = scmp.lt.s32.totalorder %s199_s16, %s199_s16 }
   0x9   :  { %242 = vmatprep.subr.bf16.mxu0 %v282_v3  ;;  %v250_v20 = vpack.c.bf16 %v107_v19, %v105_v18  ;;  %v109_v21 = vld [vmem:[%s368_s1 + $0x50] sm:$0x3f]  ;;  %v102_v26 = vsub.s32 0, %v101_v24  ;;  %p259_p0 = scmp.ne.s32.totalorder %s199_s16, %s258_s17  ;;  %p264_p2 = scmp.lt.s32.totalorder %s258_s17, %s258_s17 }
   0xa   :  { %249 = vmatprep.subr.bf16.mxu1 %v248_v17  ;;  %112 = vperm.xlu0 %257, %v109_v21  }
   0xb   :  { %251 = vmatpush1.bf16.msra.mxu1 %v250_v20  ;;  %p265_p3 = por %p264_p2, %p263_p1 }
   0xc   :  { %244 = vmatpush3.bf16.msra.mxu0 %v243_v10 }
   0xd   :  { %245 = vmatprep.subr.bf16.mxu0 %v282_v3  ;;  %p266_p4 = pnand %p265_p3, %p259_p0 }
  0x10   :  { %247 = vmatpush3.bf16.msra.mxu0 %v246_v13 }
  0x13   :  { %234 = vmatmul.mubr.msk.f32.vlgmr.msra.gmra.mrb[0].mxu0 %vm25_vm1, %v15_v14 }
  0x89   :  { %v113_v33 = vpop.permute.xlu0 %112 }
  0xe6   :  { %v95_v27 = vpop.f32.mrb[0].mxu0 }
  0xe7   :  { %v96_v28 = vadd.f32 %v95_v27, %v24_v25  ;;  %v235_v29 = vpop.f32.mrb[1].mxu0 }
  0xe9   :  { %v103_v31 = vrot.slane %v96_v28, %v102_v26 }
  0xeb   :  { %v104_v32 = vmul.f32 %v103_v31, %v99_v30 }
  0xed   :  { %207 = vmatmul.mubr.msk.f32.vlgmr.msra.gmra.mrb[0].mxu1 %vm115_vm2, %v104_v32 }
 0x1c0   :  { %v185_v34 = vpop.f32.mrb[0].mxu1 }
 0x1c1   :  { %v186_v35 = vadd.f32 %v185_v34, %v113_v33  ;;  %v187_v36 = vpop.f32.mrb[1].mxu1 }
 0x1c2   :  { %v188_v37 = vadd.f32 %v187_v36, %v113_v33 }
 0x1c3   :  { %190 = vst [vmem:[#allocation2] sm:$0x3f] %v186_v35 }
 0x1c4   :  { %191 = vst [vmem:[#allocation2 + $0x8] sm:$0x3f] %v188_v37 }
 0x1c5   :  { %269 = shalt.err (!%p266_p4)
}
 0x1c6   :  { %s270_s19 = scalar_lea.hbm %s370_s3, 256 }
 0x1c7   :  { %p271_p5 = scmp.ne.s32.totalorder %s370_s3, %s270_s19  ;;  %p274_p6 = scmp.lt.u32.totalorder %s270_s19, %s370_s3 }
 0x1c9   :  { %p276_p7 = pnand %p274_p6, %p271_p5 }
 0x1cb   :  { %279 = shalt.err (!%p276_p7)
}
 0x1cc   :  { %201 = dma.vmem_to_hbm [thread:$0]  %s199_s16, 256, %s370_s3, [#allocation3]  }
 0x1cd   :  { %280 = dma.done.wait [#allocation3], 256  }
 0x1ce   :  { %281 = vsyncadd [#allocation3], 4294967040 }
 0x1cf   :  { %205 = vsyncpa [#allocation3], 1 }

</bundles_post_ra>
